<compile_context>
chip_gen: v7x
topology: tpu7x:2x2x1
jax: 0.10.0
libtpu: 0.0.40
codegen_flags: <defaults>
</compile_context>

<pallas_src>
import jax
import jax.numpy as jnp
from jax.experimental import pallas as pl
from jax.experimental.pallas import tpu as pltpu

D_MODEL = 768
LAYER_NORM_EPS = 1e-5

# Bytes per I/O tile (per buffer).  3 MiB => 1024 rows (f32) / 2048 rows (bf16)
# at d_model=768.  Double-buffered in+out = 12 MiB of I/O VMEM plus f32 temps,
# well inside the 48 MiB scoped limit below on every generation (v7x: 64 MiB
# physical; v5e/v6e: 128 MiB physical).
MAX_TILE_BYTES = 3 * 1024 * 1024


def _layernorm_kernel(x_ref, w_ref, b_ref, o_ref):
    # x_ref: (row_tile, D_MODEL); w_ref / b_ref: (1, D_MODEL).
    # All reductions are per-row (axis=-1), so garbage rows in a ragged last
    # block cannot contaminate valid rows; their writes are masked by Pallas.
    x = x_ref[...].astype(jnp.float32)
    mean = jnp.mean(x, axis=-1, keepdims=True)
    centered = x - mean
    # torch.var(unbiased=False) == mean of squared deviations (two-pass form).
    var = jnp.mean(centered * centered, axis=-1, keepdims=True)
    inv_std = jax.lax.rsqrt(var + LAYER_NORM_EPS)          # EUP slot; free here
    w = w_ref[...].astype(jnp.float32)
    b = b_ref[...].astype(jnp.float32)
    o_ref[...] = (centered * (inv_std * w) + b).astype(o_ref.dtype)


def _round_up(x: int, m: int) -> int:
    return ((x + m - 1) // m) * m


def layernorm(residual: jax.Array, w: jax.Array, b: jax.Array) -> jax.Array:
    """residual: [batch, posn, d_model]; w, b: [d_model]."""
    batch, posn, d_model = residual.shape
    assert d_model == D_MODEL
    rows = batch * posn

    itemsize = jnp.dtype(residual.dtype).itemsize
    # Row granularity: 8 sublanes for 32-bit, 16 for 16-bit packed dtypes.
    min_rows = 16 if itemsize <= 2 else 8
    bytes_per_row = d_model * itemsize

    # Largest row tile within the byte budget (dtype-scaled), multiple of
    # min_rows.
    max_rows = max(min_rows, (MAX_TILE_BYTES // bytes_per_row) // min_rows * min_rows)
    # Prefer >= 2 grid steps so the "parallel" axis can shard across both
    # TensorCores on v7x even for small/medium inputs.
    target = _round_up(max(pl.cdiv(rows, 2), 1), min_rows)
    row_tile = min(max_rows, target)
    num_blocks = pl.cdiv(rows, row_tile)   # ragged last block handled by Pallas

    x2d = residual.reshape(rows, d_model)
    w2d = w.reshape(1, d_model)
    b2d = b.reshape(1, d_model)

    cost = pl.CostEstimate(
        flops=8 * rows * d_model,
        transcendentals=rows,
        bytes_accessed=2 * rows * d_model * itemsize
        + d_model * jnp.dtype(w.dtype).itemsize
        + d_model * jnp.dtype(b.dtype).itemsize,
    )

    out2d = pl.pallas_call(
        _layernorm_kernel,
        out_shape=jax.ShapeDtypeStruct((rows, d_model), residual.dtype),
        grid_spec=pltpu.PrefetchScalarGridSpec(
            num_scalar_prefetch=0,
            grid=(num_blocks,),
            in_specs=[
                pl.BlockSpec((row_tile, d_model), lambda i: (i, 0)),
                # Constant index_map keeps w/b VMEM-resident across the grid.
                pl.BlockSpec((1, d_model), lambda i: (0, 0)),
                pl.BlockSpec((1, d_model), lambda i: (0, 0)),
            ],
            out_specs=pl.BlockSpec((row_tile, d_model), lambda i: (i, 0)),
        ),
        compiler_params=pltpu.CompilerParams(
            # Shards the row grid across the 2 TensorCores on v7x; harmless
            # (serial loop) on v5e/v6e.
            dimension_semantics=("parallel",),
            # Budget for 2x double-buffered (in + out) 3 MiB tiles + f32 temps;
            # stays under v7x's 64 MiB physical VMEM.
            vmem_limit_bytes=48 * 1024 * 1024,
        ),
        cost_estimate=cost,
    )(x2d, w2d, b2d)

    return out2d.reshape(batch, posn, d_model)


def _reference(x, w, b):
    mean = jnp.mean(x, axis=-1, keepdims=True)
    var = jnp.mean((x - mean) ** 2, axis=-1, keepdims=True)
    return (x - mean) / jnp.sqrt(var + LAYER_NORM_EPS) * w + b


if __name__ == "__main__":
    key = jax.random.PRNGKey(0)
    kx, kw, kb, kx2 = jax.random.split(key, 4)

    # Parameters: nn.Parameter(ones)/nn.Parameter(zeros) perturbed slightly so
    # scale/bias actually matter in the check.
    w = jnp.ones((D_MODEL,), dtype=jnp.float32) + 0.01 * jax.random.normal(kw, (D_MODEL,))
    b = jnp.zeros((D_MODEL,), dtype=jnp.float32) + 0.01 * jax.random.normal(kb, (D_MODEL,))

    # Case 1: 16 rows -> row_tile=8, 2 full blocks (exercises the >=2-step
    # "parallel" grid with no ragged tail).
    batch, posn = 2, 8
    x = jax.random.normal(kx, (batch, posn, D_MODEL), dtype=jnp.float32)
    out = jax.block_until_ready(layernorm(x, w, b))
    ref = _reference(x, w, b)
    assert jnp.allclose(out, ref, atol=1e-5, rtol=1e-5), "mismatch vs reference (case 1)"

    # Case 2: 21 rows -> row_tile=16, 2 blocks with a ragged last block
    # (exercises the no-pad partial-block path).
    batch2, posn2 = 3, 7
    x2 = jax.random.normal(kx2, (batch2, posn2, D_MODEL), dtype=jnp.float32)
    out2 = jax.block_until_ready(layernorm(x2, w, b))
    ref2 = _reference(x2, w, b)
    assert jnp.allclose(out2, ref2, atol=1e-5, rtol=1e-5), "mismatch vs reference (case 2)"

    print("KERNEL_OK")
</pallas_src>

<mosaic_0001>
module attributes {stable_mosaic.version = 11 : i64} {
  func.func @_layernorm_kernel(%arg0: i32, %arg1: memref<8x768xf32, #tpu.memory_space<vmem>>, %arg2: memref<1x768xf32, #tpu.memory_space<vmem>>, %arg3: memref<1x768xf32, #tpu.memory_space<vmem>>, %arg4: memref<8x768xf32, #tpu.memory_space<vmem>>) attributes {dimension_semantics = [#tpu.dimension_semantics<parallel>], iteration_bounds = array<i64: 2>, scalar_prefetch = 0 : i64, scratch_operands = 0 : i64, tpu.core_type = #tpu.core_type<tc>, window_params = [{transform_indices = @transform_0, window_bounds = array<i64: 8, 768>}, {pipeline_mode = #tpu.pipeline_mode<synchronous>, transform_indices = @transform_1, window_bounds = array<i64: 1, 768>}, {pipeline_mode = #tpu.pipeline_mode<synchronous>, transform_indices = @transform_2, window_bounds = array<i64: 1, 768>}, {transform_indices = @transform_3, window_bounds = array<i64: 8, 768>}]} {
    %c0 = arith.constant 0 : index
    %c0_0 = arith.constant 0 : index
    %0 = vector.load %arg1[%c0, %c0_0] : memref<8x768xf32, #tpu.memory_space<vmem>>, vector<8x768xf32>
    %cst = arith.constant dense<0.000000e+00> : vector<8xf32>
    %1 = vector.multi_reduction <add>, %0, %cst [1] : vector<8x768xf32> to vector<8xf32>
    %2 = vector.shape_cast %1 : vector<8xf32> to vector<8x1xf32>
    %cst_1 = arith.constant 7.680000e+02 : f32
    %3 = vector.broadcast %cst_1 : f32 to vector<8x1xf32>
    %4 = arith.divf %2, %3 : vector<8x1xf32>
    %5 = vector.broadcast %4 : vector<8x1xf32> to vector<8x768xf32>
    %6 = arith.subf %0, %5 : vector<8x768xf32>
    %7 = arith.mulf %6, %6 : vector<8x768xf32>
    %cst_2 = arith.constant dense<0.000000e+00> : vector<8xf32>
    %8 = vector.multi_reduction <add>, %7, %cst_2 [1] : vector<8x768xf32> to vector<8xf32>
    %9 = vector.shape_cast %8 : vector<8xf32> to vector<8x1xf32>
    %cst_3 = arith.constant 7.680000e+02 : f32
    %10 = vector.broadcast %cst_3 : f32 to vector<8x1xf32>
    %11 = arith.divf %9, %10 : vector<8x1xf32>
    %cst_4 = arith.constant 9.99999974E-6 : f32
    %12 = vector.broadcast %cst_4 : f32 to vector<8x1xf32>
    %13 = arith.addf %11, %12 : vector<8x1xf32>
    %14 = math.rsqrt %13 : vector<8x1xf32>
    %c0_5 = arith.constant 0 : index
    %c0_6 = arith.constant 0 : index
    %15 = vector.load %arg2[%c0_5, %c0_6] : memref<1x768xf32, #tpu.memory_space<vmem>>, vector<1x768xf32>
    %c0_7 = arith.constant 0 : index
    %c0_8 = arith.constant 0 : index
    %16 = vector.load %arg3[%c0_7, %c0_8] : memref<1x768xf32, #tpu.memory_space<vmem>>, vector<1x768xf32>
    %17 = vector.broadcast %14 : vector<8x1xf32> to vector<8x768xf32>
    %18 = vector.broadcast %15 : vector<1x768xf32> to vector<8x768xf32>
    %19 = arith.mulf %17, %18 : vector<8x768xf32>
    %20 = arith.mulf %6, %19 : vector<8x768xf32>
    %21 = vector.broadcast %16 : vector<1x768xf32> to vector<8x768xf32>
    %22 = arith.addf %20, %21 : vector<8x768xf32>
    %c0_9 = arith.constant 0 : index
    %c0_10 = arith.constant 0 : index
    %23 = vector.load %arg4[%c0_9, %c0_10] : memref<8x768xf32, #tpu.memory_space<vmem>>, vector<8x768xf32>
    tpu.vector_store %arg4[%c0_9, %c0_10], %22 {strides = array<i32>} : memref<8x768xf32, #tpu.memory_space<vmem>>, vector<8x768xf32>,
    return
  }
  func.func @transform_0(%arg0: i32) -> (i32, i32) {
    %c0_i32 = arith.constant 0 : i32
    %c0_i32_0 = arith.constant 0 : i32
    return %arg0, %c0_i32 : i32, i32
  }
  func.func @transform_1(%arg0: i32) -> (i32, i32) {
    %c0_i32 = arith.constant 0 : i32
    %c0_i32_0 = arith.constant 0 : i32
    %c0_i32_1 = arith.constant 0 : i32
    return %c0_i32, %c0_i32_0 : i32, i32
  }
  func.func @transform_2(%arg0: i32) -> (i32, i32) {
    %c0_i32 = arith.constant 0 : i32
    %c0_i32_0 = arith.constant 0 : i32
    %c0_i32_1 = arith.constant 0 : i32
    return %c0_i32, %c0_i32_0 : i32, i32
  }
  func.func @transform_3(%arg0: i32) -> (i32, i32) {
    %c0_i32 = arith.constant 0 : i32
    %c0_i32_0 = arith.constant 0 : i32
    return %arg0, %c0_i32 : i32, i32
  }
}

</mosaic_0001>

<bundles_post_ra>
// kernel: tpu_custom_call.1
= control target key start
LH: loop header
LB: loop body
LE: loop exit
PB: predicated region body
PF: predicated region fallthrough
CT: control target
= control target key end

     0   :  { %8 = vsyncpa [#allocation3], 0  ;;  %s854_s0 = inlined_call_operand.hbm [shape: f32[16,768], index: 0, kind: input, shape index: {}]   ;;  %s855_s1 = inlined_call_operand.hbm [shape: f32[1,768], index: 1, kind: input, shape index: {}]   ;;  %s856_s2 = inlined_call_operand.vmem [shape: f32[1,768], index: 2, kind: input, shape index: {}]   ;;  %s857_s3 = inlined_call_operand.hbm [shape: f32[16,768], index: 3, kind: output, shape index: {}]  }
   0x1   :  { %10 = vsyncpa [#allocation3 + $0x1], 0 }
   0x2   :  { %11 = vsyncpa [#allocation6], 0 }
   0x3   :  { %12 = vsyncpa [#allocation4], 0 }
   0x4   :  { %14 = vsyncpa [#allocation4 + $0x1], 0  ;;  %s646_s12 = smov 0   ;;  %s648_s13 = smov 0  }
   0x5   :  { %s650_s14 = smov 0   ;;  %s652_s15 = smov 0  }
   0x6 LB: > { %s667_s16 = sadd.s32 4294967295, %s621_s15   ;;  %s420_s17 = sadd.s32 4294967294, %s621_s15   ;;  %s621_s15 = sphi %s652_s15, %s881_s15   ;;  %s617_s14 = sphi %s650_s14, %s880_s14   ;;  %s613_s13 = sphi %s648_s13, %s879_s13   ;;  %s609_s12 = sphi %s646_s12, %s878_s12  }
   0x7   : > { %p40_p0 = scmp.ne.s32.totalorder %s613_s13, %s609_s12  ;;  %p858_p1 = scmp.eq.s32.totalorder %s667_s16, 0 }
   0x8   : > { %p112_p3 = scmp.eq.s32.totalorder %s420_s17, 1  ;;  %p421_p5 = scmp.ge.s32.totalorder %s621_s15, 1 }
   0x9   : > { %p676_p4 = por %p858_p1, %p40_p0  ;;  %p119_p7 = scmp.lt.s32.totalorder %s621_s15, 3 }
   0xa   : > { %p681_p6 = por %p112_p3, %p40_p0  ;;  %s623_s21 = smov [#allocation5]  }
   0xb   : > { %s861_s18 = scalar_select %p676_p4, 1, 0 }
   0xc   : > { %s862_s19 = scalar_select %p681_p6, 1, 0 }
   0xd   : > { %p686_p8 = pnand %p421_p5, %p119_p7  ;;  %s132_s22 = sshll.u32 %s623_s21, 4  ;;  %s133_s22 = int_to_ptr.vmem [resolvable:$true] %s132_s22 }
   0xe   : > { %s694_s23 = sadd.s32 1, %s621_s15   ;;  %s27_s27 = sadd.s32 1, %s617_s14 }
   0xf   : > { %s863_s20 = scalar_select %p686_p8, 1, 0 }
  0x10   : > { %p442_p10 = pneg %p686_p8  ;;  %s24_s25 = ssub.s32 %s621_s15, %s694_s23 }
  0x11   : > { %p704_p12 = scmp.eq.s32.totalorder %s24_s25, 0  ;;  %s493_s30 = scalar_lea.hbm %s855_s1, 96 }
  0x12   : > { %p698_p11 = pnand %p442_p10, %p858_p1  ;;  %p494_p0 = scmp.ne.s32.totalorder %s855_s1, %s493_s30 }
  0x13   : > { %s865_s26 = scalar_select %p704_p12, 1, 0 }
  0x14   : > { %p495_p3 = pneg %p698_p11  ;;  %p500_p10 = scmp.lt.u32.totalorder %s493_s30, %s855_s1 }
  0x16   : > { %p496_p5 = pnand %p495_p3, %p494_p0 }
  0x18   : > { %p497_p7 = pneg %p496_p5 }
  0x1a   : > { %p502_p9 = pnand %p500_p10, %p497_p7 }
  0x1c   : > { %505 = shalt.err (!%p502_p9)
}
  0x1d   : > { %s506_s8 = scalar_lea.vmem %s133_s22, 96  ;;  %p514_p6 = scmp.lt.s32.totalorder %s133_s22, %s133_s22 }
  0x1e   : > { %p507_p1 = scmp.ne.s32.totalorder %s133_s22, %s506_s8  ;;  %p515_p4 = scmp.lt.s32.totalorder %s506_s8, %s506_s8 }
  0x20   : > { %p509_p2 = pnand %p507_p1, %p495_p3  ;;  %p516_p8 = por %p515_p4, %p514_p6 }
  0x22   : > { %p510_p13 = pneg %p509_p2 }
  0x24   : > { %p517_p12 = pnand %p516_p8, %p510_p13 }
  0x26   : > { %520 = shalt.err (!%p517_p12)
}
  0x27   : > { %445 = dma.hbm_to_vmem [thread:$0]  (!%p698_p11), %s855_s1, 96, %s133_s22, [#allocation6]  }
  0x28   : > { %p866_p1 = scmp.ne.s32.totalorder %s865_s26, 0  ;;  %p35_p2 = scmp.eq.s32.totalorder %s621_s15, 0 }
  0x29   : > { %p867_p4 = scmp.ne.s32.totalorder %s617_s14, %s613_s13  ;;  %p868_p6 = scmp.eq.s32.totalorder %s667_s16, 1 }
  0x2a   : > { %s730_s11 = scalar_select %p866_p1, %s617_s14, %s27_s27  }
  0x2b   : > { %p738_p8 = por %p868_p6, %p867_p4  ;;  %p455_p9 = scmp.lt.s32.totalorder %s621_s15, 2 }
  0x2c   : > { %s146_s21 = sand.u32 1, %s617_s14   ;;  %p870_p12 = pmov %p867_p4 }
  0x2d   : > { %s430_s24 = smul.u32 48, %s146_s21  ;;  %s147_s4 = scalar_lea.sflag [#allocation3], %s146_s21 }
  0x2e   : > { %p36_p13 = por %p35_p2, %p870_p12  ;;  %s431_s25 = smul.u32 768, %s621_s15 }
  0x2f   : > { %s150_s29 = scalar_lea.vmem [#allocation2], %s430_s24  ;;  %s526_s8 = scalar_lea.hbm %s854_s0, 1536 }
  0x30   : > { %p748_p0 = pnand %p455_p9, %p36_p13  ;;  %s755_s27 = scalar_lea.hbm %s854_s0, %s431_s25 }
  0x31   : > { %s158_s30 = sshll.u32 %s150_s29, 4  ;;  %s521_s5 = scalar_lea.hbm %s755_s27, 768  ;;  %s757_s30 = int_to_ptr.vmem [resolvable:$true] %s158_s30 }
  0x32   : > { %p522_p11 = scmp.ne.s32.totalorder %s755_s27, %s521_s5  ;;  %p523_p3 = pneg %p748_p0 }
  0x33   : > { %p527_p10 = scmp.lt.u32.totalorder %s755_s27, %s854_s0  ;;  %p528_p1 = scmp.lt.u32.totalorder %s526_s8, %s521_s5 }
  0x34   : > { %p524_p5 = pnand %p523_p3, %p522_p11  ;;  %p530_p4 = scmp.lt.u32.totalorder %s521_s5, %s755_s27 }
  0x35   : > { %p529_p2 = por %p528_p1, %p527_p10 }
  0x36   : > { %p525_p7 = pneg %p524_p5 }
  0x37   : > { %p531_p6 = por %p530_p4, %p529_p2 }
  0x39   : > { %p532_p9 = pnand %p531_p6, %p525_p7 }
  0x3b   : > { %535 = shalt.err (!%p532_p9)
}
  0x3c   : > { %s536_s21 = scalar_lea.vmem %s757_s30, 768  ;;  %s624_s24 = smov [#allocation2]  }
  0x3d   : > { %p537_p12 = scmp.ne.s32.totalorder %s757_s30, %s536_s21  ;;  %s541_s25 = sshll.u32 %s624_s24, 4  ;;  %s542_s25 = int_to_ptr.vmem [resolvable:$false] %s541_s25 }
  0x3e   : > { %s543_s22 = scalar_lea.vmem %s542_s25, 1536  ;;  %p544_p5 = scmp.lt.s32.totalorder %s757_s30, %s542_s25 }
  0x3f   : > { %p539_p13 = pnand %p537_p12, %p523_p3  ;;  %p545_p10 = scmp.lt.s32.totalorder %s543_s22, %s536_s21 }
  0x41   : > { %p540_p11 = pneg %p539_p13  ;;  %p546_p1 = por %p545_p10, %p544_p5 }
  0x43   : > { %p547_p2 = pnand %p546_p1, %p540_p11 }
  0x45   : > { %550 = shalt.err (!%p547_p2)
}
  0x46   : > { %449 = dma.hbm_to_vmem [thread:$0]  (!%p748_p0), %s755_s27, 768, %s757_s30, %s147_s4  }
  0x47   : > { %p872_p7 = scmp.ne.s32.totalorder %s863_s20, 0 }
  0x48   : > { %s787_s26 = sand.u32 (!%p872_p7), 1, %s613_s13   ;;  %p873_p3 = scmp.ne.s32.totalorder (!%p872_p7), %s861_s18, 0 }
  0x49   : > { %167 = sbr.rel (%p872_p7) target bundleno = 432 (0x1b0), region = 32  ;;  %s170_s5 = scalar_lea.sflag (!%p872_p7), [#allocation3], %s787_s26 }
  0x4a   : > { %s432_s29 = smul.u32 (!%p872_p7), 48, %s787_s26 }
  0x4c   : > { %s173_s6 = scalar_lea.vmem (!%p872_p7), [#allocation2], %s432_s29 }
  0x50   : > { %596 = dma.done.wait (%p873_p3), %s170_s5, 768  }
  0x51   : > { %598 = vsyncadd (%p873_p3), %s170_s5, 4294966528  ;;  %p874_p0 = scmp.eq.s32.totalorder %s667_s16, 0 }
  0x53   : > { %600 = dma.done.wait (%p874_p0), [#allocation6], 96   ;;  %p875_p4 = pmov %p874_p0 }
  0x54   : > { %v200_v0 = vld [vmem:[%s173_s6] sm:$0xff]  ;;  %v201_v1 = vld [vmem:[%s173_s6 + $0x8] sm:$0xff]  ;;  %v202_v2 = vld [vmem:[%s173_s6 + $0x10] sm:$0xff]  ;;  %v240_v31 = vlaneseq  ;;  %s433_s28 = smul.u32 768, %s667_s16  ;;  %s199_s27 = scalar_lea.vmem [#allocation7], %s432_s29 }
  0x55   : > { %602 = vsyncadd (%p875_p4), [#allocation6], 4294967200  ;;  %v206_v3 = vadd.f32 %v201_v1, %v200_v0  ;;  %v203_v4 = vld [vmem:[%s173_s6 + $0x18] sm:$0xff]  ;;  %v204_v6 = vld [vmem:[%s173_s6 + $0x20] sm:$0xff]  ;;  %s340_s30 = sshll.u32 %s199_s27, 4  ;;  %s326_s8 = scalar_lea.sflag [#allocation4], %s787_s26  ;;  %s812_s30 = int_to_ptr.vmem [resolvable:$true] %s340_s30 }
  0x56   : > { %v205_v8 = vld [vmem:[%s173_s6 + $0x28] sm:$0xff]  ;;  %v241_v34 = vshrl.u32 %v240_v31, 7  ;;  %v237_v39 = vld [vmem:[#allocation5] sm:$0x3f]  ;;  %s810_s16 = scalar_lea.hbm %s857_s3, %s433_s28  ;;  %s551_s9 = scalar_lea.vmem %s812_s30, 768 }
  0x57   : > { %v207_v5 = vadd.f32 %v206_v3, %v202_v2  ;;  %v238_v42 = vld [vmem:[%s856_s2] sm:$0x3f]  ;;  %p552_p6 = scmp.ne.s32.totalorder %s812_s30, %s551_s9  ;;  %s625_s10 = smov [#allocation7]  }
  0x58   : > { %v242_v35 = vsub.s32 0, %v241_v34  ;;  %v246_v36 = vsub.s32 1, %v241_v34  ;;  %v250_v37 = vsub.s32 2, %v241_v34  ;;  %v254_v38 = vsub.s32 3, %v241_v34  ;;  %s555_s21 = sshll.u32 %s625_s10, 4  ;;  %s556_s21 = int_to_ptr.vmem [resolvable:$false] %s555_s21 }
  0x59   : > { %v208_v7 = vadd.f32 %v207_v5, %v203_v4  ;;  %v258_v40 = vsub.s32 4, %v241_v34  ;;  %v262_v41 = vsub.s32 5, %v241_v34  ;;  %p553_p9 = pnand %p552_p6, %p738_p8  ;;  %s557_s24 = scalar_lea.vmem %s556_s21, 1536 }
  0x5a   : > { %v243_v43 = vrot.slane %v237_v39, %v242_v35  ;;  %v247_v44 = vrot.slane %v237_v39, %v246_v36  ;;  %v251_v45 = vrot.slane %v237_v39, %v250_v37  ;;  %v255_v46 = vrot.slane %v237_v39, %v254_v38  ;;  %p558_p13 = scmp.lt.s32.totalorder %s812_s30, %s556_s21  ;;  %p559_p11 = scmp.lt.s32.totalorder %s557_s24, %s551_s9 }
  0x5b   : > { %v209_v9 = vadd.f32 %v208_v7, %v204_v6  ;;  %v259_v47 = vrot.slane %v237_v39, %v258_v40  ;;  %v263_v48 = vrot.slane %v237_v39, %v262_v41  ;;  %v286_v50 = vrot.slane %v238_v42, %v242_v35  ;;  %p554_p12 = pneg %p553_p9 }
  0x5c   : > { %v290_v51 = vrot.slane %v238_v42, %v246_v36  ;;  %v294_v52 = vrot.slane %v238_v42, %v250_v37  ;;  %v298_v53 = vrot.slane %v238_v42, %v254_v38  ;;  %v302_v60 = vrot.slane %v238_v42, %v258_v40  ;;  %p560_p5 = por %p559_p11, %p558_p13 }
  0x5d   : > { %v210_v10 = vadd.f32 %v209_v9, %v205_v8  ;;  %v306_v61 = vrot.slane %v238_v42, %v262_v41 }
  0x5e   : > { %p561_p10 = pnand %p560_p5, %p554_p12 }
  0x5f   : > { %211 = vadd.xlane.f32.xlu0 %v210_v10 }
  0xec   : > { %v212_v11 = vpop.xlane.xlu0 %211 }
  0xed   : > { %v214_v12 = vmul.f32 0.0013020834, %v212_v11 }
  0xef   : > { %v215_v13 = vsub.f32 %v200_v0, %v214_v12  ;;  %v216_v14 = vsub.f32 %v201_v1, %v214_v12  ;;  %v217_v15 = vsub.f32 %v202_v2, %v214_v12  ;;  %v218_v16 = vsub.f32 %v203_v4, %v214_v12 }
  0xf0   : > { %v219_v19 = vsub.f32 %v204_v6, %v214_v12  ;;  %v220_v22 = vsub.f32 %v205_v8, %v214_v12 }
  0xf1   : > { %v221_v17 = vmul.f32 %v215_v13, %v215_v13  ;;  %v222_v18 = vmul.f32 %v216_v14, %v216_v14  ;;  %v223_v20 = vmul.f32 %v217_v15, %v217_v15  ;;  %v224_v23 = vmul.f32 %v218_v16, %v218_v16 }
  0xf2   : > { %v225_v25 = vmul.f32 %v219_v19, %v219_v19  ;;  %v226_v27 = vmul.f32 %v220_v22, %v220_v22 }
  0xf3   : > { %v227_v21 = vadd.f32 %v222_v18, %v221_v17 }
  0xf5   : > { %v228_v24 = vadd.f32 %v227_v21, %v223_v20 }
  0xf7   : > { %v229_v26 = vadd.f32 %v228_v24, %v224_v23 }
  0xf9   : > { %v230_v28 = vadd.f32 %v229_v26, %v225_v25 }
  0xfb   : > { %v231_v29 = vadd.f32 %v230_v28, %v226_v27 }
  0xfd   : > { %232 = vadd.xlane.f32.xlu0 %v231_v29 }
 0x18a   : > { %v233_v30 = vpop.xlane.xlu0 %232 }
 0x18b   : > { %v234_v32 = vmul.f32 0.0013020834, %v233_v30 }
 0x18d   : > { %v235_v33 = vadd.f32 1e-05, %v234_v32 }
 0x18f   : > { %491 = vrsqrt.f32 %v235_v33 }
 0x199   : > { %v492_v49 = vpop.eup %491 }
 0x19a   : > { %v270_v54 = vmul.f32 %v492_v49, %v243_v43  ;;  %v271_v55 = vmul.f32 %v492_v49, %v247_v44  ;;  %v272_v56 = vmul.f32 %v492_v49, %v251_v45  ;;  %v273_v57 = vmul.f32 %v492_v49, %v255_v46 }
 0x19b   : > { %v274_v58 = vmul.f32 %v492_v49, %v259_v47  ;;  %v275_v59 = vmul.f32 %v492_v49, %v263_v48 }
 0x19c   : > { %v276_v62 = vmul.f32 %v270_v54, %v215_v13  ;;  %v277_v63 = vmul.f32 %v271_v55, %v216_v14  ;;  %v278_v0 = vmul.f32 %v272_v56, %v217_v15  ;;  %v279_v1 = vmul.f32 %v273_v57, %v218_v16 }
 0x19d   : > { %v280_v2 = vmul.f32 %v274_v58, %v219_v19  ;;  %v281_v3 = vmul.f32 %v275_v59, %v220_v22 }
 0x19e   : > { %v313_v4 = vadd.f32 %v286_v50, %v276_v62  ;;  %v314_v5 = vadd.f32 %v290_v51, %v277_v63  ;;  %v315_v6 = vadd.f32 %v294_v52, %v278_v0  ;;  %v316_v7 = vadd.f32 %v298_v53, %v279_v1 }
 0x19f   : > { %v317_v8 = vadd.f32 %v302_v60, %v280_v2  ;;  %v318_v9 = vadd.f32 %v306_v61, %v281_v3 }
 0x1a0   : > { %319 = vst [vmem:[%s199_s27] sm:$0xff] %v313_v4  ;;  %320 = vst [vmem:[%s199_s27 + $0x8] sm:$0xff] %v314_v5 }
 0x1a1   : > { %321 = vst [vmem:[%s199_s27 + $0x10] sm:$0xff] %v315_v6  ;;  %322 = vst [vmem:[%s199_s27 + $0x18] sm:$0xff] %v316_v7 }
 0x1a2   : > { %323 = vst [vmem:[%s199_s27 + $0x20] sm:$0xff] %v317_v8  ;;  %324 = vst [vmem:[%s199_s27 + $0x28] sm:$0xff] %v318_v9 }
 0x1a3   : > { %564 = shalt.err (!%p561_p10)
}
 0x1a4   : > { %s565_s25 = scalar_lea.hbm %s810_s16, 768  ;;  %s569_s29 = scalar_lea.hbm %s857_s3, 1536 }
 0x1a5   : > { %p566_p1 = scmp.ne.s32.totalorder %s810_s16, %s565_s25  ;;  %p570_p3 = scmp.lt.u32.totalorder %s810_s16, %s857_s3 }
 0x1a6   : > { %p571_p0 = scmp.lt.u32.totalorder %s569_s29, %s565_s25  ;;  %p573_p6 = scmp.lt.u32.totalorder %s565_s25, %s810_s16 }
 0x1a7   : > { %p567_p2 = pnand %p566_p1, %p738_p8 }
 0x1a8   : > { %p572_p4 = por %p571_p0, %p570_p3 }
 0x1a9   : > { %p568_p7 = pneg %p567_p2 }
 0x1aa   : > { %p574_p9 = por %p573_p6, %p572_p4 }
 0x1ac   : > { %p575_p12 = pnand %p574_p9, %p568_p7 }
 0x1ae   : > { %578 = shalt.err (!%p575_p12)
}
 0x1af   : > { %440 = dma.vmem_to_hbm [thread:$0]  (%p738_p8), %s812_s30, 768, %s810_s16, %s326_s8  }
 0x1b0 PF: > { %s352_s18 = sand.u32 1, %s609_s12   ;;  %p876_p13 = scmp.ne.s32.totalorder %s862_s19, 0 }
 0x1b1   : > { %p877_p11 = scmp.ge.s32.totalorder %s621_s15, 2  ;;  %s353_s20 = scalar_lea.sflag [#allocation4], %s352_s18 }
 0x1b3   : > { %p451_p5 = pnand %p877_p11, %p876_p13 }
 0x1b5   : > { %604 = dma.done.wait (!%p451_p5), %s353_s20, 768  }
 0x1b6   : > { %606 = vsyncadd (!%p451_p5), %s353_s20, 4294966528  ;;  %p17_p10 = scmp.ge.s32.totalorder %s694_s23, 4   ;;  %s878_s12 = smov %s613_s13 }
 0x1b7   : > { %s879_s13 = smov %s617_s14  ;;  %s880_s14 = smov %s730_s11 }
 0x1b8   : > { %s881_s15 = smov %s694_s23  ;;  %19 = sbr.rel (!%p17_p10) target bundleno = 6 (0x6), region = 81 }
 0x1bf   :  { %358 = vsyncpa [#allocation3], 1 }
 0x1c0   :  { %360 = vsyncpa [#allocation3 + $0x1], 1 }
 0x1c1   :  { %361 = vsyncpa [#allocation6], 1 }
 0x1c2   :  { %362 = vsyncpa [#allocation4], 1 }
 0x1c3   :  { %364 = vsyncpa [#allocation4 + $0x1], 1 }

</bundles_post_ra>
